<compile_context>
chip_gen: v5e
topology: v5e:2x2
jax: 0.10.0
libtpu: 0.0.40
codegen_flags: <defaults>
</compile_context>

<pallas_src>
import jax
import jax.numpy as jnp
from jax.experimental import pallas as pl
from jax.experimental.pallas import tpu as pltpu


def _gelu_kernel(x_ref, o_ref):
    x = x_ref[...].astype(jnp.float32)
    # 0.5 * x * (1 + tanh(sqrt(2/pi) * (x + 0.044715 * x^3)))
    c = jnp.float32(0.7978845608028654)  # sqrt(2/pi)
    inner = c * (x + jnp.float32(0.044715) * x * x * x)
    y = jnp.float32(0.5) * x * (jnp.float32(1.0) + jnp.tanh(inner))
    o_ref[...] = y.astype(o_ref.dtype)


def _round_up(n, m):
    return ((n + m - 1) // m) * m


def gelu(x, *, lane_width=512, max_row_tile=1024):
    """Tanh-approximation GELU, elementwise, matching the PyTorch module.

    The input is flattened to a lane-dense (rows, lane_width) slab, padded so
    the row count is a multiple of the row tile, processed in large blocks,
    then sliced back to the original shape.
    """
    orig_shape = x.shape
    orig_dtype = x.dtype
    total = x.size

    # Rows of the lane-dense 2D slab (last dim = lane_width, multiple of 128).
    rows = pl.cdiv(total, lane_width)
    # Row tile: big (multi-MiB blocks) but never larger than the padded row
    # count; keep it a multiple of 16 (safe sublane alignment for f32/bf16).
    row_tile = min(max_row_tile, _round_up(rows, 16))
    rows_padded = _round_up(rows, row_tile)
    padded_total = rows_padded * lane_width

    x_flat = x.reshape(-1)
    if padded_total != total:
        x_flat = jnp.pad(x_flat, (0, padded_total - total))
    x2d = x_flat.reshape(rows_padded, lane_width)

    out2d = pl.pallas_call(
        _gelu_kernel,
        out_shape=jax.ShapeDtypeStruct((rows_padded, lane_width), orig_dtype),
        grid_spec=pltpu.PrefetchScalarGridSpec(
            num_scalar_prefetch=0,
            grid=(rows_padded // row_tile,),
            in_specs=[pl.BlockSpec((row_tile, lane_width), lambda i: (i, 0))],
            out_specs=pl.BlockSpec((row_tile, lane_width), lambda i: (i, 0)),
        ),
        compiler_params=pltpu.CompilerParams(
            dimension_semantics=("parallel",),
            # 2 MiB blocks * 2 buffers * (in + out) = ~8 MiB live; raise the
            # scoped limit so larger tiles are never capped, while staying
            # well under v7x's 64 MiB physical VMEM.
            vmem_limit_bytes=48 << 20,
        ),
    )(x2d)

    out_flat = out2d.reshape(-1)
    if padded_total != total:
        out_flat = out_flat[:total]
    return out_flat.reshape(orig_shape)


def gelu_ref(x):
    xf = x.astype(jnp.float32)
    c = jnp.sqrt(2.0 / jnp.pi).astype(jnp.float32)
    y = 0.5 * xf * (1.0 + jnp.tanh(c * (xf + 0.044715 * xf ** 3)))
    return y.astype(x.dtype)


if __name__ == "__main__":
    key = jax.random.PRNGKey(0)

    # batch=2, seq=8, hidden=32 — typical activation shape feeding a GELU
    x = jax.random.normal(key, (2, 8, 32), dtype=jnp.float32)
    y = gelu(x)
    jax.block_until_ready(y)
    y_ref = gelu_ref(x)
    assert y.shape == x.shape and y.dtype == x.dtype
    assert jnp.allclose(y, y_ref, atol=1e-5, rtol=1e-5)

    # Exercise the padding / non-divisible path with an awkward small shape.
    x2 = jax.random.normal(jax.random.PRNGKey(1), (3, 7, 33), dtype=jnp.float32)
    y2 = gelu(x2)
    jax.block_until_ready(y2)
    assert y2.shape == x2.shape and y2.dtype == x2.dtype
    assert jnp.allclose(y2, gelu_ref(x2), atol=1e-5, rtol=1e-5)

    print("KERNEL_OK")
</pallas_src>

<mosaic_0001>
module attributes {stable_mosaic.version = 11 : i64} {
  func.func @_gelu_kernel(%arg0: i32, %arg1: memref<16x512xf32, #tpu.memory_space<vmem>>, %arg2: memref<16x512xf32, #tpu.memory_space<vmem>>) attributes {dimension_semantics = [#tpu.dimension_semantics<parallel>], iteration_bounds = array<i64: 1>, scalar_prefetch = 0 : i64, scratch_operands = 0 : i64, tpu.core_type = #tpu.core_type<tc>, window_params = [{transform_indices = @transform_0, window_bounds = array<i64: 16, 512>}, {transform_indices = @transform_1, window_bounds = array<i64: 16, 512>}]} {
    %c0 = arith.constant 0 : index
    %c0_0 = arith.constant 0 : index
    %0 = vector.load %arg1[%c0, %c0_0] : memref<16x512xf32, #tpu.memory_space<vmem>>, vector<16x512xf32>
    %cst = arith.constant 4.471500e-02 : f32
    %1 = vector.broadcast %cst : f32 to vector<16x512xf32>
    %2 = arith.mulf %1, %0 : vector<16x512xf32>
    %3 = arith.mulf %2, %0 : vector<16x512xf32>
    %4 = arith.mulf %3, %0 : vector<16x512xf32>
    %5 = arith.addf %0, %4 : vector<16x512xf32>
    %cst_1 = arith.constant 0.797884583 : f32
    %6 = vector.broadcast %cst_1 : f32 to vector<16x512xf32>
    %7 = arith.mulf %6, %5 : vector<16x512xf32>
    %cst_2 = arith.constant 5.000000e-01 : f32
    %8 = vector.broadcast %cst_2 : f32 to vector<16x512xf32>
    %9 = arith.mulf %8, %0 : vector<16x512xf32>
    %10 = math.tanh %7 : vector<16x512xf32>
    %cst_3 = arith.constant 1.000000e+00 : f32
    %11 = vector.broadcast %cst_3 : f32 to vector<16x512xf32>
    %12 = arith.addf %11, %10 : vector<16x512xf32>
    %13 = arith.mulf %9, %12 : vector<16x512xf32>
    %c0_4 = arith.constant 0 : index
    %c0_5 = arith.constant 0 : index
    %14 = vector.load %arg2[%c0_4, %c0_5] : memref<16x512xf32, #tpu.memory_space<vmem>>, vector<16x512xf32>
    tpu.vector_store %arg2[%c0_4, %c0_5], %13 {strides = array<i32>} : memref<16x512xf32, #tpu.memory_space<vmem>>, vector<16x512xf32>,
    return
  }
  func.func @transform_0(%arg0: i32) -> (i32, i32) {
    %c0_i32 = arith.constant 0 : i32
    %c0_i32_0 = arith.constant 0 : i32
    return %arg0, %c0_i32 : i32, i32
  }
  func.func @transform_1(%arg0: i32) -> (i32, i32) {
    %c0_i32 = arith.constant 0 : i32
    %c0_i32_0 = arith.constant 0 : i32
    return %arg0, %c0_i32 : i32, i32
  }
}

</mosaic_0001>

<bundles_post_ra>
// kernel: tpu_custom_call.1
= control target key start
LH: loop header
LB: loop body
LE: loop exit
PB: predicated region body
PF: predicated region fallthrough
CT: control target
= control target key end

     0   :  { %6 = vsyncpa [#allocation3], 0  ;;  %s244_s0 = inlined_call_operand.hbm [shape: f32[16,512], index: 0, kind: input, shape index: {}]   ;;  %s245_s1 = inlined_call_operand.hbm [shape: f32[16,512], index: 1, kind: output, shape index: {}]  }
   0x1   :  { %7 = vsyncpa [#allocation4], 0  ;;  %s12_s8 = sshll.u32 %s244_s0, 4  ;;  %s204_s9 = smov [#allocation2]   ;;  %s13_s8 = int_to_ptr.hbm [resolvable:$true] %s12_s8 }
   0x2   :  { %s14_s10 = sshll.u32 %s204_s9, 4  ;;  %s205_s11 = smov 512   ;;  %s15_s10 = int_to_ptr.vmem [resolvable:$true] %s14_s10 }
   0x3   :  { %s206_s12 = smov 32  }
   0x4   :  { %20 = dma.hbm_to_vmem [thread:$0]  %s13_s8, 1024, %s15_s10, [#allocation3], %s205_s11, %s205_s11, %s206_s12  }
   0x5   :  { %200 = dma.done.wait [#allocation3], 1024  }
   0x6   :  { %201 = vsyncadd [#allocation3], 4294966272  ;;  %v25_v0 = vld [vmem:[#allocation2] sm:$0xff]  ;;  %v26_v1 = vld [vmem:[#allocation2 + $0x8] sm:$0xff]  ;;  %s207_s0 = smov [#allocation5]   ;;  %s119_s16 = sshll.u32 %s245_s1, 4  ;;  %s120_s16 = int_to_ptr.hbm [resolvable:$true] %s119_s16 }
   0x7   :  { %v27_v2 = vld [vmem:[#allocation2 + $0x10] sm:$0xff]  ;;  %v33_v3 = vmul.f32 0.044715, %v25_v0  ;;  %v34_v4 = vmul.f32 0.044715, %v26_v1  ;;  %v28_v6 = vld [vmem:[#allocation2 + $0x18] sm:$0xff] }
   0x8   :  { %v35_v5 = vmul.f32 0.044715, %v27_v2  ;;  %v29_v7 = vld [vmem:[#allocation2 + $0x20] sm:$0xff]  ;;  %v224_v8 = vld [vmem:[#allocation2 + $0x28] sm:$0xff]  ;;  %v36_v11 = vmul.f32 0.044715, %v28_v6 }
   0x9   :  { %v41_v9 = vmul.f32 %v33_v3, %v25_v0  ;;  %v42_v10 = vmul.f32 %v34_v4, %v26_v1  ;;  %v226_v12 = vld [vmem:[#allocation2 + $0x30] sm:$0xff]  ;;  %v37_v14 = vmul.f32 0.044715, %v29_v7  ;;  %v38_v15 = vmul.f32 0.044715, %v224_v8  ;;  %v32_v23 = vld [vmem:[#allocation2 + $0x38] sm:$0xff] }
   0xa   :  { %v43_v13 = vmul.f32 %v35_v5, %v27_v2  ;;  %v44_v18 = vmul.f32 %v36_v11, %v28_v6  ;;  %v39_v22 = vmul.f32 0.044715, %v226_v12  ;;  %v40_v34 = vmul.f32 0.044715, %v32_v23  ;;  %s117_s13 = sshll.u32 %s207_s0, 4  ;;  %s118_s13 = int_to_ptr.vmem [resolvable:$true] %s117_s13 }
   0xb   :  { %v49_v16 = vmul.f32 %v41_v9, %v25_v0  ;;  %v50_v17 = vmul.f32 %v42_v10, %v26_v1  ;;  %v45_v20 = vmul.f32 %v37_v14, %v29_v7  ;;  %v46_v21 = vmul.f32 %v38_v15, %v224_v8 }
   0xc   :  { %v51_v19 = vmul.f32 %v43_v13, %v27_v2  ;;  %v52_v26 = vmul.f32 %v44_v18, %v28_v6  ;;  %v47_v30 = vmul.f32 %v39_v22, %v226_v12  ;;  %v48_v40 = vmul.f32 %v40_v34, %v32_v23 }
   0xd   :  { %v57_v24 = vadd.f32 %v49_v16, %v25_v0  ;;  %v58_v25 = vadd.f32 %v50_v17, %v26_v1  ;;  %v53_v28 = vmul.f32 %v45_v20, %v29_v7  ;;  %v54_v29 = vmul.f32 %v46_v21, %v224_v8 }
   0xe   :  { %v59_v27 = vadd.f32 %v51_v19, %v27_v2  ;;  %v60_v33 = vadd.f32 %v52_v26, %v28_v6  ;;  %v55_v38 = vmul.f32 %v47_v30, %v226_v12  ;;  %v56_v44 = vmul.f32 %v48_v40, %v32_v23 }
   0xf   :  { %v65_v31 = vmul.f32 0.7978846, %v57_v24  ;;  %v66_v32 = vmul.f32 0.7978846, %v58_v25  ;;  %v61_v36 = vadd.f32 %v53_v28, %v29_v7  ;;  %v62_v37 = vadd.f32 %v54_v29, %v224_v8 }
  0x10   :  { %v67_v35 = vmul.f32 0.7978846, %v59_v27  ;;  %v68_v39 = vmul.f32 0.7978846, %v60_v33  ;;  %v63_v43 = vadd.f32 %v55_v38, %v226_v12  ;;  %v64_v46 = vadd.f32 %v56_v44, %v32_v23 }
  0x11   :  { %136 = vtanh.f32 %v65_v31  ;;  %v69_v41 = vmul.f32 0.7978846, %v61_v36  ;;  %v70_v42 = vmul.f32 0.7978846, %v62_v37  ;;  %v73_v47 = vmul.f32 0.5, %v25_v0 }
  0x12   :  { %138 = vtanh.f32 %v66_v32  ;;  %v71_v45 = vmul.f32 0.7978846, %v63_v43  ;;  %v74_v49 = vmul.f32 0.5, %v26_v1  ;;  %v72_v50 = vmul.f32 0.7978846, %v64_v46 }
  0x13   :  { %140 = vtanh.f32 %v67_v35  ;;  %v75_v53 = vmul.f32 0.5, %v27_v2  ;;  %v76_v56 = vmul.f32 0.5, %v28_v6  ;;  %v77_v60 = vmul.f32 0.5, %v29_v7 }
  0x14   :  { %142 = vtanh.f32 %v68_v39  ;;  %v78_v0 = vmul.f32 0.5, %v224_v8  ;;  %v79_v5 = vmul.f32 0.5, %v226_v12  ;;  %v80_v13 = vmul.f32 0.5, %v32_v23 }
  0x15   :  { %144 = vtanh.f32 %v69_v41 }
  0x16   :  { %146 = vtanh.f32 %v70_v42 }
  0x17   :  { %v137_v48 = vpop.eup %136  ;;  %148 = vtanh.f32 %v71_v45 }
  0x18   :  { %v139_v51 = vpop.eup %138  ;;  %v89_v52 = vadd.f32 1.0, %v137_v48  ;;  %150 = vtanh.f32 %v72_v50 }
  0x19   :  { %v141_v54 = vpop.eup %140  ;;  %v90_v55 = vadd.f32 1.0, %v139_v51 }
  0x1a   :  { %v143_v57 = vpop.eup %142  ;;  %v97_v58 = vmul.f32 %v89_v52, %v73_v47  ;;  %v91_v59 = vadd.f32 1.0, %v141_v54 }
  0x1b   :  { %v145_v61 = vpop.eup %144  ;;  %v98_v62 = vmul.f32 %v90_v55, %v74_v49  ;;  %v92_v63 = vadd.f32 1.0, %v143_v57 }
  0x1c   :  { %v147_v3 = vpop.eup %146  ;;  %105 = vst [vmem:[#allocation5] sm:$0xff] %v97_v58  ;;  %v99_v1 = vmul.f32 %v91_v59, %v75_v53  ;;  %v93_v4 = vadd.f32 1.0, %v145_v61 }
  0x1d   :  { %v149_v2 = vpop.eup %148  ;;  %106 = vst [vmem:[#allocation5 + $0x8] sm:$0xff] %v98_v62  ;;  %v100_v9 = vmul.f32 %v92_v63, %v76_v56  ;;  %v94_v6 = vadd.f32 1.0, %v147_v3 }
  0x1e   :  { %107 = vst [vmem:[#allocation5 + $0x10] sm:$0xff] %v99_v1  ;;  %v101_v10 = vmul.f32 %v93_v4, %v77_v60  ;;  %v95_v11 = vadd.f32 1.0, %v149_v2  ;;  %v151_v7 = vpop.eup %150 }
  0x1f   :  { %108 = vst [vmem:[#allocation5 + $0x18] sm:$0xff] %v100_v9  ;;  %v102_v14 = vmul.f32 %v94_v6, %v78_v0  ;;  %v96_v12 = vadd.f32 1.0, %v151_v7 }
  0x20   :  { %109 = vst [vmem:[#allocation5 + $0x20] sm:$0xff] %v101_v10  ;;  %v103_v8 = vmul.f32 %v95_v11, %v79_v5 }
  0x21   :  { %110 = vst [vmem:[#allocation5 + $0x28] sm:$0xff] %v102_v14  ;;  %v104_v15 = vmul.f32 %v96_v12, %v80_v13 }
  0x22   :  { %111 = vst [vmem:[#allocation5 + $0x30] sm:$0xff] %v103_v8 }
  0x23   :  { %112 = vst [vmem:[#allocation5 + $0x38] sm:$0xff] %v104_v15 }
  0x24   :  { %125 = dma.vmem_to_hbm [thread:$0]  %s118_s13, 1024, %s120_s16, [#allocation4], %s205_s11, %s205_s11, %s206_s12  }
  0x25   :  { %202 = dma.done.wait [#allocation4], 1024  }
  0x26   :  { %203 = vsyncadd [#allocation4], 4294966272 }
  0x27   :  { %130 = vsyncpa [#allocation3], 1 }
  0x28   :  { %131 = vsyncpa [#allocation4], 1 }

</bundles_post_ra>
